<compile_context>
chip_gen: v7x
topology: tpu7x:2x2x1
jax: 0.10.0
libtpu: 0.0.40
codegen_flags: <defaults>
</compile_context>

<pallas_src>
import jax
import jax.numpy as jnp
from jax.experimental import pallas as pl
from jax.experimental.pallas import tpu as pltpu


def _round_up(a, b):
    return ((a + b - 1) // b) * b


def _dropout2d_kernel(x_ref, s_ref, o_ref):
    # s_ref is (tr, 1): per-(n, c)-channel scale, 0.0 (dropped) or 1/(1-p)
    # (kept).  Multiply in the output dtype so bf16 tiles never round-trip
    # through an f32-sized temporary.
    o_ref[...] = x_ref[...] * s_ref[...].astype(o_ref.dtype)


def _pick_tiles(R, S, itemsize, max_block_bytes=4 << 20):
    # Sublane-aligned rows, lane-dense (multiple-of-128) columns, block capped
    # at ~4 MiB so the double-buffered in+out footprint stays well inside
    # scoped VMEM on every generation (incl. v7x's 64 MiB physical).
    tr = min(256, _round_up(R, 8))
    lane_budget = max(128, ((max_block_bytes // (tr * itemsize)) // 128) * 128)
    ts = min(_round_up(S, 128), lane_budget)
    return tr, ts


def dropout2d_forward(x, p=0.5, seed=0, training=True):
    """Pallas equivalent of DropoutLayer.forward (nn.Dropout2d on NCHW input)."""
    if (not training) or p == 0.0:
        return x                      # eval mode / p=0: identity, no kernel
    if p >= 1.0:
        return jnp.zeros_like(x)      # every channel dropped

    N, C, H, W = x.shape
    R, S = N * C, H * W
    x2d = x.reshape(R, S)             # one row per (n, c) channel

    # Per-channel keep/scale column, computed in the wrapper (R*4 bytes of
    # extra HBM traffic -- negligible).  Using jax.random avoids the old
    # in-kernel seed-collision scheme and keeps both grid axes "parallel".
    key = jax.random.PRNGKey(seed)
    keep = jax.random.bernoulli(key, 1.0 - p, (R, 1))
    scale = keep.astype(jnp.float32) * jnp.float32(1.0 / (1.0 - p))

    tr, ts = _pick_tiles(R, S, x.dtype.itemsize)
    grid = (pl.cdiv(R, tr), pl.cdiv(S, ts))

    out = pl.pallas_call(
        _dropout2d_kernel,
        out_shape=jax.ShapeDtypeStruct((R, S), x.dtype),
        grid_spec=pltpu.PrefetchScalarGridSpec(
            num_scalar_prefetch=0,
            grid=grid,
            in_specs=[pl.BlockSpec((tr, ts), lambda i, j: (i, j)),
                      pl.BlockSpec((tr, 1), lambda i, j: (i, 0))],
            out_specs=pl.BlockSpec((tr, ts), lambda i, j: (i, j)),
        ),
        compiler_params=pltpu.CompilerParams(
            dimension_semantics=("parallel", "parallel"),
            vmem_limit_bytes=48 * 1024 * 1024),
    )(x2d, scale)

    return out.reshape(N, C, H, W)

# TODO(synk): block_summary / count_module_train_params bookkeeping from the
# PyTorch module is pure Python metadata with no compute; not translated.


if __name__ == "__main__":
    key = jax.random.PRNGKey(0)
    B, C, H, W = 2, 4, 16, 16
    p = 0.5
    x = jax.random.normal(key, (B, C, H, W), dtype=jnp.float32)

    out = dropout2d_forward(x, p=p, seed=0, training=True)
    out = jax.block_until_ready(out)
    assert out.shape == x.shape and out.dtype == x.dtype

    # Structural correctness: every (n, c) channel is either all-zero
    # (dropped) or an exact copy of the input channel scaled by 1/(1-p).
    x_flat = x.reshape(B * C, H * W)
    o_flat = out.reshape(B * C, H * W)
    scale = 1.0 / (1.0 - p)
    dropped = jnp.all(o_flat == 0.0, axis=1)
    kept = jnp.all(jnp.abs(o_flat - x_flat * scale) < 1e-5, axis=1)
    assert bool(jnp.all(dropped | kept))

    # Determinism: same seed -> same mask.
    out2 = jax.block_until_ready(dropout2d_forward(x, p=p, seed=0,
                                                   training=True))
    assert bool(jnp.all(out == out2))

    # Eval mode is the identity; p=0 is the identity.
    out_eval = dropout2d_forward(x, p=p, training=False)
    assert bool(jnp.all(out_eval == x))
    out_p0 = dropout2d_forward(x, p=0.0, seed=3, training=True)
    assert bool(jnp.all(out_p0 == x))

    print("KERNEL_OK")
</pallas_src>

<mosaic_0001>
module attributes {stable_mosaic.version = 11 : i64} {
  func.func @_dropout2d_kernel(%arg0: i32, %arg1: i32, %arg2: memref<8x256xf32, #tpu.memory_space<vmem>>, %arg3: memref<8x1xf32, #tpu.memory_space<vmem>>, %arg4: memref<8x256xf32, #tpu.memory_space<vmem>>) attributes {dimension_semantics = [#tpu.dimension_semantics<parallel>, #tpu.dimension_semantics<parallel>], iteration_bounds = array<i64: 1, 1>, scalar_prefetch = 0 : i64, scratch_operands = 0 : i64, tpu.core_type = #tpu.core_type<tc>, window_params = [{transform_indices = @transform_0, window_bounds = array<i64: 8, 256>}, {transform_indices = @transform_1, window_bounds = array<i64: 8, 1>}, {transform_indices = @transform_2, window_bounds = array<i64: 8, 256>}]} {
    %c0 = arith.constant 0 : index
    %c0_0 = arith.constant 0 : index
    %0 = vector.load %arg2[%c0, %c0_0] : memref<8x256xf32, #tpu.memory_space<vmem>>, vector<8x256xf32>
    %c0_1 = arith.constant 0 : index
    %c0_2 = arith.constant 0 : index
    %1 = vector.load %arg3[%c0_1, %c0_2] : memref<8x1xf32, #tpu.memory_space<vmem>>, vector<8x1xf32>
    %2 = vector.broadcast %1 : vector<8x1xf32> to vector<8x256xf32>
    %3 = arith.mulf %0, %2 : vector<8x256xf32>
    %c0_3 = arith.constant 0 : index
    %c0_4 = arith.constant 0 : index
    %4 = vector.load %arg4[%c0_3, %c0_4] : memref<8x256xf32, #tpu.memory_space<vmem>>, vector<8x256xf32>
    tpu.vector_store %arg4[%c0_3, %c0_4], %3 {strides = array<i32>} : memref<8x256xf32, #tpu.memory_space<vmem>>, vector<8x256xf32>,
    return
  }
  func.func @transform_0(%arg0: i32, %arg1: i32) -> (i32, i32) {
    %c0_i32 = arith.constant 0 : i32
    return %arg0, %arg1 : i32, i32
  }
  func.func @transform_1(%arg0: i32, %arg1: i32) -> (i32, i32) {
    %c0_i32 = arith.constant 0 : i32
    %c0_i32_0 = arith.constant 0 : i32
    return %arg0, %c0_i32 : i32, i32
  }
  func.func @transform_2(%arg0: i32, %arg1: i32) -> (i32, i32) {
    %c0_i32 = arith.constant 0 : i32
    return %arg0, %arg1 : i32, i32
  }
}

</mosaic_0001>

<bundles_post_ra>
// kernel: tpu_custom_call.1
= control target key start
LH: loop header
LB: loop body
LE: loop exit
PB: predicated region body
PF: predicated region fallthrough
CT: control target
= control target key end

     0   :  { %7 = vsyncpa [#allocation3], 0  ;;  %s148_s0 = inlined_call_operand.hbm [shape: f32[8,256], index: 0, kind: input, shape index: {}]   ;;  %s149_s1 = inlined_call_operand.vmem [shape: f32[8,1], index: 1, kind: input, shape index: {}]   ;;  %s150_s2 = inlined_call_operand.hbm [shape: f32[8,256], index: 2, kind: output, shape index: {}]  }
   0x1   :  { %8 = vsyncpa [#allocation4], 0  ;;  %s103_s9 = smov [#allocation2]   ;;  %s55_s13 = scalar_lea.hbm %s148_s0, 256 }
   0x2   :  { %s15_s10 = sshll.u32 %s103_s9, 4  ;;  %p56_p0 = scmp.ne.s32.totalorder %s148_s0, %s55_s13  ;;  %s16_s10 = int_to_ptr.vmem [resolvable:$true] %s15_s10 }
   0x3   :  { %p59_p1 = scmp.lt.u32.totalorder %s55_s13, %s148_s0 }
   0x5   :  { %p61_p2 = pnand %p59_p1, %p56_p0 }
   0x7   :  { %64 = shalt.err (!%p61_p2)
}
   0x8   :  { %s65_s18 = scalar_lea.vmem %s16_s10, 256  ;;  %p70_p4 = scmp.lt.s32.totalorder %s16_s10, %s16_s10 }
   0x9   :  { %p66_p3 = scmp.ne.s32.totalorder %s16_s10, %s65_s18  ;;  %p71_p5 = scmp.lt.s32.totalorder %s65_s18, %s65_s18 }
   0xb   :  { %p72_p6 = por %p71_p5, %p70_p4 }
   0xd   :  { %p73_p7 = pnand %p72_p6, %p66_p3 }
   0xf   :  { %76 = shalt.err (!%p73_p7)
}
  0x10   :  { %18 = dma.hbm_to_vmem [thread:$0]  %s148_s0, 256, %s16_s10, [#allocation3]  }
  0x11   :  { %99 = dma.done.wait [#allocation3], 256  }
  0x12   :  { %100 = vsyncadd [#allocation3], 4294967040  ;;  %v104_v0 = vmov 0   ;;  %v26_v1 = vld [vmem:[%s149_s1] sm:$0xff]  ;;  %v25_v3 = vld [vmem:[#allocation2 + $0x8] sm:$0xff]  ;;  %s105_s23 = smov [#allocation5]  }
  0x13   :  { %54 = vset.pattern.permute.xlu0 %v104_v0  ;;  %v24_v2 = vld [vmem:[#allocation2] sm:$0xff]  ;;  %s42_s24 = sshll.u32 %s105_s23, 4  ;;  %s43_s24 = int_to_ptr.vmem [resolvable:$true] %s42_s24 }
  0x14   :  { %29 = vperm.xlu0 %54, %v26_v1   ;;  %s77_s0 = scalar_lea.vmem %s43_s24, 256  ;;  %p82_p9 = scmp.lt.s32.totalorder %s43_s24, %s43_s24 }
  0x15   :  { %p78_p8 = scmp.ne.s32.totalorder %s43_s24, %s77_s0  ;;  %p83_p10 = scmp.lt.s32.totalorder %s77_s0, %s77_s0 }
  0x17   :  { %p84_p11 = por %p83_p10, %p82_p9 }
  0x19   :  { %p85_p12 = pnand %p84_p11, %p78_p8 }
  0x93   :  { %v30_v4 = vpop.permute.xlu0 %29 }
  0x94   :  { %v32_v5 = vmul.f32 %v30_v4, %v24_v2  ;;  %v33_v6 = vmul.f32 %v30_v4, %v25_v3 }
  0x96   :  { %34 = vst [vmem:[#allocation5] sm:$0xff] %v32_v5  ;;  %35 = vst [vmem:[#allocation5 + $0x8] sm:$0xff] %v33_v6 }
  0x97   :  { %88 = shalt.err (!%p85_p12)
}
  0x98   :  { %s89_s26 = scalar_lea.hbm %s150_s2, 256 }
  0x99   :  { %p90_p13 = scmp.ne.s32.totalorder %s150_s2, %s89_s26  ;;  %p93_p0 = scmp.lt.u32.totalorder %s89_s26, %s150_s2 }
  0x9b   :  { %p95_p1 = pnand %p93_p0, %p90_p13 }
  0x9d   :  { %98 = shalt.err (!%p95_p1)
}
  0x9e   :  { %45 = dma.vmem_to_hbm [thread:$0]  %s43_s24, 256, %s150_s2, [#allocation4]  }
  0x9f   :  { %101 = dma.done.wait [#allocation4], 256  }
  0xa0   :  { %102 = vsyncadd [#allocation4], 4294967040 }
  0xa1   :  { %49 = vsyncpa [#allocation3], 1 }
  0xa2   :  { %50 = vsyncpa [#allocation4], 1 }

</bundles_post_ra>
